<compile_context>
chip_gen: v7x
topology: tpu7x:2x2x1
jax: 0.10.0
libtpu: 0.0.40
codegen_flags: <defaults>
</compile_context>

<pallas_src>
import jax
import jax.numpy as jnp
from jax.experimental import pallas as pl
from jax.experimental.pallas import tpu as pltpu

LN_EPS = 1e-5  # PyTorch nn.LayerNorm default


def _round_up(n, m):
    return ((n + m - 1) // m) * m


def _layernorm(h, gamma, beta):
    # Two-pass (centered) variance: numerically stable, reuses (h - mu) once.
    mu = jnp.mean(h, axis=-1, keepdims=True)
    d = h - mu
    var = jnp.mean(d * d, axis=-1, keepdims=True)
    return d * jax.lax.rsqrt(var + LN_EPS) * gamma + beta


def net_kernel(x_ref,
               w1_ref, b1_ref, g1_ref, be1_ref,
               w2_ref, b2_ref, g2_ref, be2_ref,
               wm_ref, bm_ref,
               o_ref):
    x = x_ref[...]  # f32 [tile_b, num_inputs]

    # linear1 -> LayerNorm -> ReLU
    h = jnp.dot(x, w1_ref[...], preferred_element_type=jnp.float32) + b1_ref[...]
    h = jnp.maximum(_layernorm(h, g1_ref[...], be1_ref[...]), 0.0)

    # linear2 -> LayerNorm -> ReLU
    h = jnp.dot(h, w2_ref[...], preferred_element_type=jnp.float32) + b2_ref[...]
    h = jnp.maximum(_layernorm(h, g2_ref[...], be2_ref[...]), 0.0)

    # mu head -> tanh
    q = jnp.dot(h, wm_ref[...], preferred_element_type=jnp.float32) + bm_ref[...]
    o_ref[...] = jnp.tanh(q).astype(o_ref.dtype)


def net_forward(x, params, *, tile_b=256):
    B, ni = x.shape
    hdim = params["w1"].shape[1]
    no = params["wm"].shape[1]

    # Batch tile: multiple of 8 (sublane), capped so tiny batches don't over-pad.
    tb = min(_round_up(tile_b, 8), _round_up(B, 8))
    Bp = _round_up(B, tb)
    if Bp != B:
        x = jnp.pad(x, ((0, Bp - B), (0, 0)))  # zero rows are LN-safe (eps > 0)

    grid = (Bp // tb,)

    def full_spec(arr):
        # Grid-invariant operand: whole array stays resident in VMEM across steps.
        return pl.BlockSpec(arr.shape, lambda i: (0, 0))

    param_names = ("w1", "b1", "g1", "be1", "w2", "b2", "g2", "be2", "wm", "bm")
    in_specs = [pl.BlockSpec((tb, ni), lambda i: (i, 0))] + [
        full_spec(params[k]) for k in param_names
    ]

    # Scheduler hint: FLOPs for 3 matmuls, transcendentals for tanh + 2 rsqrt/row.
    flops = 2 * Bp * (ni * hdim + hdim * hdim + hdim * no)
    transc = Bp * (no + 2)
    bytes_accessed = 4 * (Bp * (ni + no)
                          + ni * hdim + hdim * hdim + hdim * no
                          + 6 * hdim + 2 * no)

    out = pl.pallas_call(
        net_kernel,
        out_shape=jax.ShapeDtypeStruct((Bp, no), jnp.float32),
        grid=grid,
        in_specs=in_specs,
        out_specs=pl.BlockSpec((tb, no), lambda i: (i, 0)),
        compiler_params=pltpu.CompilerParams(
            dimension_semantics=("parallel",)),
        cost_estimate=pl.CostEstimate(
            flops=flops, transcendentals=transc, bytes_accessed=bytes_accessed),
    )(x,
      params["w1"], params["b1"], params["g1"], params["be1"],
      params["w2"], params["b2"], params["g2"], params["be2"],
      params["wm"], params["bm"])

    return out[:B] if Bp != B else out


def init_params(key, num_inputs, num_outputs, hidden_size):
    ks = jax.random.split(key, 6)

    def lin(kw, kb, fan_in, fan_out, scale=1.0):
        bound = 1.0 / jnp.sqrt(fan_in)
        w = jax.random.uniform(kw, (fan_in, fan_out), jnp.float32, -bound, bound) * scale
        b = jax.random.uniform(kb, (1, fan_out), jnp.float32, -bound, bound) * scale
        return w, b

    w1, b1 = lin(ks[0], ks[1], num_inputs, hidden_size)
    w2, b2 = lin(ks[2], ks[3], hidden_size, hidden_size)
    # mu layer: weights and bias multiplied by 0.1 as in the PyTorch module
    wm, bm = lin(ks[4], ks[5], hidden_size, num_outputs, scale=0.1)

    return {
        "w1": w1, "b1": b1,
        "g1": jnp.ones((1, hidden_size), jnp.float32),
        "be1": jnp.zeros((1, hidden_size), jnp.float32),
        "w2": w2, "b2": b2,
        "g2": jnp.ones((1, hidden_size), jnp.float32),
        "be2": jnp.zeros((1, hidden_size), jnp.float32),
        "wm": wm, "bm": bm,
    }


def reference_forward(x, p):
    def ln(h, g, b):
        mu = jnp.mean(h, axis=-1, keepdims=True)
        var = jnp.mean((h - mu) ** 2, axis=-1, keepdims=True)
        return (h - mu) * jax.lax.rsqrt(var + LN_EPS) * g + b
    h = jnp.maximum(ln(x @ p["w1"] + p["b1"], p["g1"], p["be1"]), 0.0)
    h = jnp.maximum(ln(h @ p["w2"] + p["b2"], p["g2"], p["be2"]), 0.0)
    return jnp.tanh(h @ p["wm"] + p["bm"])


if __name__ == "__main__":
    num_inputs, num_outputs, hidden_size = 16, 8, 32
    batch = 8

    key = jax.random.PRNGKey(0)
    k_x, k_p, k_x2 = jax.random.split(key, 3)
    params = init_params(k_p, num_inputs, num_outputs, hidden_size)

    # Small-batch case (single tile).
    x = jax.random.normal(k_x, (batch, num_inputs), jnp.float32)
    q = net_forward(x, params)
    jax.block_until_ready(q)
    q_ref = reference_forward(x, params)
    assert q.shape == (batch, num_outputs)
    assert jnp.allclose(q, q_ref, atol=1e-5, rtol=1e-5)

    # Larger batch case: exercises the batch grid, tiling, and padding path.
    big_batch = 300  # not a multiple of the tile -> padded internally
    x_big = jax.random.normal(k_x2, (big_batch, num_inputs), jnp.float32)
    q_big = net_forward(x_big, params)
    jax.block_until_ready(q_big)
    q_big_ref = reference_forward(x_big, params)
    assert q_big.shape == (big_batch, num_outputs)
    assert jnp.allclose(q_big, q_big_ref, atol=1e-5, rtol=1e-5)

    print("KERNEL_OK")
</pallas_src>

<mosaic_0001>
module attributes {stable_mosaic.version = 11 : i64} {
  func.func @net_kernel(%arg0: i32, %arg1: memref<8x16xf32, #tpu.memory_space<vmem>>, %arg2: memref<16x32xf32, #tpu.memory_space<vmem>>, %arg3: memref<1x32xf32, #tpu.memory_space<vmem>>, %arg4: memref<1x32xf32, #tpu.memory_space<vmem>>, %arg5: memref<1x32xf32, #tpu.memory_space<vmem>>, %arg6: memref<32x32xf32, #tpu.memory_space<vmem>>, %arg7: memref<1x32xf32, #tpu.memory_space<vmem>>, %arg8: memref<1x32xf32, #tpu.memory_space<vmem>>, %arg9: memref<1x32xf32, #tpu.memory_space<vmem>>, %arg10: memref<32x8xf32, #tpu.memory_space<vmem>>, %arg11: memref<1x8xf32, #tpu.memory_space<vmem>>, %arg12: memref<8x8xf32, #tpu.memory_space<vmem>>) attributes {dimension_semantics = [#tpu.dimension_semantics<parallel>], iteration_bounds = array<i64: 1>, scalar_prefetch = 0 : i64, scratch_operands = 0 : i64, tpu.core_type = #tpu.core_type<tc>, window_params = [{transform_indices = @transform_0, window_bounds = array<i64: 8, 16>}, {pipeline_mode = #tpu.pipeline_mode<synchronous>, transform_indices = @transform_1, window_bounds = array<i64: 16, 32>}, {pipeline_mode = #tpu.pipeline_mode<synchronous>, transform_indices = @transform_2, window_bounds = array<i64: 1, 32>}, {pipeline_mode = #tpu.pipeline_mode<synchronous>, transform_indices = @transform_3, window_bounds = array<i64: 1, 32>}, {pipeline_mode = #tpu.pipeline_mode<synchronous>, transform_indices = @transform_4, window_bounds = array<i64: 1, 32>}, {pipeline_mode = #tpu.pipeline_mode<synchronous>, transform_indices = @transform_5, window_bounds = array<i64: 32, 32>}, {pipeline_mode = #tpu.pipeline_mode<synchronous>, transform_indices = @transform_6, window_bounds = array<i64: 1, 32>}, {pipeline_mode = #tpu.pipeline_mode<synchronous>, transform_indices = @transform_7, window_bounds = array<i64: 1, 32>}, {pipeline_mode = #tpu.pipeline_mode<synchronous>, transform_indices = @transform_8, window_bounds = array<i64: 1, 32>}, {pipeline_mode = #tpu.pipeline_mode<synchronous>, transform_indices = @transform_9, window_bounds = array<i64: 32, 8>}, {pipeline_mode = #tpu.pipeline_mode<synchronous>, transform_indices = @transform_10, window_bounds = array<i64: 1, 8>}, {transform_indices = @transform_11, window_bounds = array<i64: 8, 8>}]} {
    %c0 = arith.constant 0 : index
    %c0_0 = arith.constant 0 : index
    %0 = vector.load %arg1[%c0, %c0_0] : memref<8x16xf32, #tpu.memory_space<vmem>>, vector<8x16xf32>
    %c0_1 = arith.constant 0 : index
    %c0_2 = arith.constant 0 : index
    %1 = vector.load %arg2[%c0_1, %c0_2] : memref<16x32xf32, #tpu.memory_space<vmem>>, vector<16x32xf32>
    %cst = arith.constant dense<0.000000e+00> : vector<8x32xf32>
    %2 = tpu.matmul %0, %1, %cst {dimension_numbers = #tpu.dot_dimension_numbers<[1], [0], [0], [1], [0, 0, 1, 1], [], []>} : vector<8x16xf32>, vector<16x32xf32>, vector<8x32xf32> -> vector<8x32xf32>
    %c0_3 = arith.constant 0 : index
    %c0_4 = arith.constant 0 : index
    %3 = vector.load %arg3[%c0_3, %c0_4] : memref<1x32xf32, #tpu.memory_space<vmem>>, vector<1x32xf32>
    %4 = vector.broadcast %3 : vector<1x32xf32> to vector<8x32xf32>
    %5 = arith.addf %2, %4 : vector<8x32xf32>
    %c0_5 = arith.constant 0 : index
    %c0_6 = arith.constant 0 : index
    %6 = vector.load %arg4[%c0_5, %c0_6] : memref<1x32xf32, #tpu.memory_space<vmem>>, vector<1x32xf32>
    %c0_7 = arith.constant 0 : index
    %c0_8 = arith.constant 0 : index
    %7 = vector.load %arg5[%c0_7, %c0_8] : memref<1x32xf32, #tpu.memory_space<vmem>>, vector<1x32xf32>
    %cst_9 = arith.constant dense<0.000000e+00> : vector<8xf32>
    %8 = vector.multi_reduction <add>, %5, %cst_9 [1] : vector<8x32xf32> to vector<8xf32>
    %9 = vector.shape_cast %8 : vector<8xf32> to vector<8x1xf32>
    %cst_10 = arith.constant 3.200000e+01 : f32
    %10 = vector.broadcast %cst_10 : f32 to vector<8x1xf32>
    %11 = arith.divf %9, %10 : vector<8x1xf32>
    %12 = vector.broadcast %11 : vector<8x1xf32> to vector<8x32xf32>
    %13 = arith.subf %5, %12 : vector<8x32xf32>
    %14 = arith.mulf %13, %13 : vector<8x32xf32>
    %cst_11 = arith.constant dense<0.000000e+00> : vector<8xf32>
    %15 = vector.multi_reduction <add>, %14, %cst_11 [1] : vector<8x32xf32> to vector<8xf32>
    %16 = vector.shape_cast %15 : vector<8xf32> to vector<8x1xf32>
    %cst_12 = arith.constant 3.200000e+01 : f32
    %17 = vector.broadcast %cst_12 : f32 to vector<8x1xf32>
    %18 = arith.divf %16, %17 : vector<8x1xf32>
    %cst_13 = arith.constant 9.99999974E-6 : f32
    %19 = vector.broadcast %cst_13 : f32 to vector<8x1xf32>
    %20 = arith.addf %18, %19 : vector<8x1xf32>
    %21 = math.rsqrt %20 : vector<8x1xf32>
    %22 = vector.broadcast %21 : vector<8x1xf32> to vector<8x32xf32>
    %23 = arith.mulf %13, %22 : vector<8x32xf32>
    %24 = vector.broadcast %6 : vector<1x32xf32> to vector<8x32xf32>
    %25 = arith.mulf %23, %24 : vector<8x32xf32>
    %26 = vector.broadcast %7 : vector<1x32xf32> to vector<8x32xf32>
    %27 = arith.addf %25, %26 : vector<8x32xf32>
    %cst_14 = arith.constant 0.000000e+00 : f32
    %28 = vector.broadcast %cst_14 : f32 to vector<8x32xf32>
    %29 = arith.maximumf %27, %28 : vector<8x32xf32>
    %c0_15 = arith.constant 0 : index
    %c0_16 = arith.constant 0 : index
    %30 = vector.load %arg6[%c0_15, %c0_16] : memref<32x32xf32, #tpu.memory_space<vmem>>, vector<32x32xf32>
    %cst_17 = arith.constant dense<0.000000e+00> : vector<8x32xf32>
    %31 = tpu.matmul %29, %30, %cst_17 {dimension_numbers = #tpu.dot_dimension_numbers<[1], [0], [0], [1], [0, 0, 1, 1], [], []>} : vector<8x32xf32>, vector<32x32xf32>, vector<8x32xf32> -> vector<8x32xf32>
    %c0_18 = arith.constant 0 : index
    %c0_19 = arith.constant 0 : index
    %32 = vector.load %arg7[%c0_18, %c0_19] : memref<1x32xf32, #tpu.memory_space<vmem>>, vector<1x32xf32>
    %33 = vector.broadcast %32 : vector<1x32xf32> to vector<8x32xf32>
    %34 = arith.addf %31, %33 : vector<8x32xf32>
    %c0_20 = arith.constant 0 : index
    %c0_21 = arith.constant 0 : index
    %35 = vector.load %arg8[%c0_20, %c0_21] : memref<1x32xf32, #tpu.memory_space<vmem>>, vector<1x32xf32>
    %c0_22 = arith.constant 0 : index
    %c0_23 = arith.constant 0 : index
    %36 = vector.load %arg9[%c0_22, %c0_23] : memref<1x32xf32, #tpu.memory_space<vmem>>, vector<1x32xf32>
    %cst_24 = arith.constant dense<0.000000e+00> : vector<8xf32>
    %37 = vector.multi_reduction <add>, %34, %cst_24 [1] : vector<8x32xf32> to vector<8xf32>
    %38 = vector.shape_cast %37 : vector<8xf32> to vector<8x1xf32>
    %cst_25 = arith.constant 3.200000e+01 : f32
    %39 = vector.broadcast %cst_25 : f32 to vector<8x1xf32>
    %40 = arith.divf %38, %39 : vector<8x1xf32>
    %41 = vector.broadcast %40 : vector<8x1xf32> to vector<8x32xf32>
    %42 = arith.subf %34, %41 : vector<8x32xf32>
    %43 = arith.mulf %42, %42 : vector<8x32xf32>
    %cst_26 = arith.constant dense<0.000000e+00> : vector<8xf32>
    %44 = vector.multi_reduction <add>, %43, %cst_26 [1] : vector<8x32xf32> to vector<8xf32>
    %45 = vector.shape_cast %44 : vector<8xf32> to vector<8x1xf32>
    %cst_27 = arith.constant 3.200000e+01 : f32
    %46 = vector.broadcast %cst_27 : f32 to vector<8x1xf32>
    %47 = arith.divf %45, %46 : vector<8x1xf32>
    %cst_28 = arith.constant 9.99999974E-6 : f32
    %48 = vector.broadcast %cst_28 : f32 to vector<8x1xf32>
    %49 = arith.addf %47, %48 : vector<8x1xf32>
    %50 = math.rsqrt %49 : vector<8x1xf32>
    %51 = vector.broadcast %50 : vector<8x1xf32> to vector<8x32xf32>
    %52 = arith.mulf %42, %51 : vector<8x32xf32>
    %53 = vector.broadcast %35 : vector<1x32xf32> to vector<8x32xf32>
    %54 = arith.mulf %52, %53 : vector<8x32xf32>
    %55 = vector.broadcast %36 : vector<1x32xf32> to vector<8x32xf32>
    %56 = arith.addf %54, %55 : vector<8x32xf32>
    %cst_29 = arith.constant 0.000000e+00 : f32
    %57 = vector.broadcast %cst_29 : f32 to vector<8x32xf32>
    %58 = arith.maximumf %56, %57 : vector<8x32xf32>
    %c0_30 = arith.constant 0 : index
    %c0_31 = arith.constant 0 : index
    %59 = vector.load %arg10[%c0_30, %c0_31] : memref<32x8xf32, #tpu.memory_space<vmem>>, vector<32x8xf32>
    %cst_32 = arith.constant dense<0.000000e+00> : vector<8x8xf32>
    %60 = tpu.matmul %58, %59, %cst_32 {dimension_numbers = #tpu.dot_dimension_numbers<[1], [0], [0], [1], [0, 0, 1, 1], [], []>} : vector<8x32xf32>, vector<32x8xf32>, vector<8x8xf32> -> vector<8x8xf32>
    %c0_33 = arith.constant 0 : index
    %c0_34 = arith.constant 0 : index
    %61 = vector.load %arg11[%c0_33, %c0_34] : memref<1x8xf32, #tpu.memory_space<vmem>>, vector<1x8xf32>
    %62 = vector.broadcast %61 : vector<1x8xf32> to vector<8x8xf32>
    %63 = arith.addf %60, %62 : vector<8x8xf32>
    %64 = math.tanh %63 : vector<8x8xf32>
    %c0_35 = arith.constant 0 : index
    %c0_36 = arith.constant 0 : index
    %65 = vector.load %arg12[%c0_35, %c0_36] : memref<8x8xf32, #tpu.memory_space<vmem>>, vector<8x8xf32>
    tpu.vector_store %arg12[%c0_35, %c0_36], %64 {strides = array<i32>} : memref<8x8xf32, #tpu.memory_space<vmem>>, vector<8x8xf32>,
    return
  }
  func.func @transform_0(%arg0: i32) -> (i32, i32) {
    %c0_i32 = arith.constant 0 : i32
    %c0_i32_0 = arith.constant 0 : i32
    return %arg0, %c0_i32 : i32, i32
  }
  func.func @transform_1(%arg0: i32) -> (i32, i32) {
    %c0_i32 = arith.constant 0 : i32
    %c0_i32_0 = arith.constant 0 : i32
    %c0_i32_1 = arith.constant 0 : i32
    return %c0_i32, %c0_i32_0 : i32, i32
  }
  func.func @transform_2(%arg0: i32) -> (i32, i32) {
    %c0_i32 = arith.constant 0 : i32
    %c0_i32_0 = arith.constant 0 : i32
    %c0_i32_1 = arith.constant 0 : i32
    return %c0_i32, %c0_i32_0 : i32, i32
  }
  func.func @transform_3(%arg0: i32) -> (i32, i32) {
    %c0_i32 = arith.constant 0 : i32
    %c0_i32_0 = arith.constant 0 : i32
    %c0_i32_1 = arith.constant 0 : i32
    return %c0_i32, %c0_i32_0 : i32, i32
  }
  func.func @transform_4(%arg0: i32) -> (i32, i32) {
    %c0_i32 = arith.constant 0 : i32
    %c0_i32_0 = arith.constant 0 : i32
    %c0_i32_1 = arith.constant 0 : i32
    return %c0_i32, %c0_i32_0 : i32, i32
  }
  func.func @transform_5(%arg0: i32) -> (i32, i32) {
    %c0_i32 = arith.constant 0 : i32
    %c0_i32_0 = arith.constant 0 : i32
    %c0_i32_1 = arith.constant 0 : i32
    return %c0_i32, %c0_i32_0 : i32, i32
  }
  func.func @transform_6(%arg0: i32) -> (i32, i32) {
    %c0_i32 = arith.constant 0 : i32
    %c0_i32_0 = arith.constant 0 : i32
    %c0_i32_1 = arith.constant 0 : i32
    return %c0_i32, %c0_i32_0 : i32, i32
  }
  func.func @transform_7(%arg0: i32) -> (i32, i32) {
    %c0_i32 = arith.constant 0 : i32
    %c0_i32_0 = arith.constant 0 : i32
    %c0_i32_1 = arith.constant 0 : i32
    return %c0_i32, %c0_i32_0 : i32, i32
  }
  func.func @transform_8(%arg0: i32) -> (i32, i32) {
    %c0_i32 = arith.constant 0 : i32
    %c0_i32_0 = arith.constant 0 : i32
    %c0_i32_1 = arith.constant 0 : i32
    return %c0_i32, %c0_i32_0 : i32, i32
  }
  func.func @transform_9(%arg0: i32) -> (i32, i32) {
    %c0_i32 = arith.constant 0 : i32
    %c0_i32_0 = arith.constant 0 : i32
    %c0_i32_1 = arith.constant 0 : i32
    return %c0_i32, %c0_i32_0 : i32, i32
  }
  func.func @transform_10(%arg0: i32) -> (i32, i32) {
    %c0_i32 = arith.constant 0 : i32
    %c0_i32_0 = arith.constant 0 : i32
    %c0_i32_1 = arith.constant 0 : i32
    return %c0_i32, %c0_i32_0 : i32, i32
  }
  func.func @transform_11(%arg0: i32) -> (i32, i32) {
    %c0_i32 = arith.constant 0 : i32
    %c0_i32_0 = arith.constant 0 : i32
    return %arg0, %c0_i32 : i32, i32
  }
}

</mosaic_0001>

<bundles_post_ra>
// kernel: tpu_custom_call.1
= control target key start
LH: loop header
LB: loop body
LE: loop exit
PB: predicated region body
PF: predicated region fallthrough
CT: control target
= control target key end

     0   :  { %16 = vsyncpa [#allocation3], 0  ;;  %s660_s0 = inlined_call_operand.hbm [shape: f32[8,16], index: 0, kind: input, shape index: {}]   ;;  %s661_s1 = inlined_call_operand.vmem [shape: f32[16,32], index: 1, kind: input, shape index: {}]   ;;  %s662_s2 = inlined_call_operand.vmem [shape: f32[1,32], index: 2, kind: input, shape index: {}]   ;;  %s663_s3 = inlined_call_operand.vmem [shape: f32[1,32], index: 3, kind: input, shape index: {}]   ;;  %s664_s4 = inlined_call_operand.vmem [shape: f32[1,32], index: 4, kind: input, shape index: {}]   ;;  %s665_s5 = inlined_call_operand.vmem [shape: f32[32,32], index: 5, kind: input, shape index: {}]   ;;  %s666_s6 = inlined_call_operand.vmem [shape: f32[1,32], index: 6, kind: input, shape index: {}]   ;;  %s667_s7 = inlined_call_operand.vmem [shape: f32[1,32], index: 7, kind: input, shape index: {}]   ;;  %s668_s8 = inlined_call_operand.vmem [shape: f32[1,32], index: 8, kind: input, shape index: {}]   ;;  %s669_s9 = inlined_call_operand.vmem [shape: f32[32,8], index: 9, kind: input, shape index: {}]   ;;  %s670_s10 = inlined_call_operand.vmem [shape: f32[1,8], index: 10, kind: input, shape index: {}]   ;;  %s671_s11 = inlined_call_operand.hbm [shape: f32[8,8], index: 11, kind: output, shape index: {}]  }
   0x1   :  { %17 = vsyncpa [#allocation4], 0  ;;  %s509_s17 = smov [#allocation2]   ;;  %s461_s21 = scalar_lea.hbm %s660_s0, 128 }
   0x2   :  { %s24_s18 = sshll.u32 %s509_s17, 4  ;;  %p462_p0 = scmp.ne.s32.totalorder %s660_s0, %s461_s21  ;;  %s25_s18 = int_to_ptr.vmem [resolvable:$true] %s24_s18 }
   0x3   :  { %p465_p1 = scmp.lt.u32.totalorder %s461_s21, %s660_s0 }
   0x5   :  { %p467_p2 = pnand %p465_p1, %p462_p0 }
   0x7   :  { %470 = shalt.err (!%p467_p2)
}
   0x8   :  { %s471_s26 = scalar_lea.vmem %s25_s18, 128  ;;  %p476_p4 = scmp.lt.s32.totalorder %s25_s18, %s25_s18 }
   0x9   :  { %p472_p3 = scmp.ne.s32.totalorder %s25_s18, %s471_s26  ;;  %p477_p5 = scmp.lt.s32.totalorder %s471_s26, %s471_s26 }
   0xb   :  { %p478_p6 = por %p477_p5, %p476_p4 }
   0xd   :  { %p479_p7 = pnand %p478_p6, %p472_p3 }
   0xf   :  { %482 = shalt.err (!%p479_p7)
}
  0x10   :  { %27 = dma.hbm_to_vmem [thread:$0]  %s660_s0, 128, %s25_s18, [#allocation3]  }
  0x11   :  { %505 = dma.done.wait [#allocation3], 128  }
  0x12   :  { %506 = vsyncadd [#allocation3], 4294967168  ;;  %v510_v0 = vmov 0.0|0.0   ;;  %vm511_vm0 = vmmov 0   ;;  %v512_v1 = vmov 0.0   ;;  %v52_v2 = vld [vmem:[%s661_s1] sm:$0xff] }
  0x13   :  { %435 = vmatprep.subr.bf16.mxu0 %v510_v0  ;;  %410 = vmatprep.mubr.msk.f32.mxu0 %vm511_vm0, %v512_v1  ;;  %v53_v3 = vld [vmem:[%s661_s1 + $0x8] sm:$0xff]  ;;  %v51_v5 = vld [vmem:[#allocation2] sm:$0xff]  ;;  %vm61_vm1 = vcmask 130048   ;;  %vm137_vm2 = vcmask 261120   ;;  %v169_v19 = vld [vmem:[%s665_s5 + $0x10] sm:$0xff]  ;;  %s513_s15 = smov [#allocation5]  }
  0x14   :  { %438 = vmatprep.subr.bf16.mxu1 %v510_v0  ;;  %421 = vmatprep.mubr.msk.f32.mxu1 %vm511_vm0, %v512_v1  ;;  %v436_v4 = vpack.c.bf16 %v53_v3, %v52_v2  ;;  %v383_v6 = vld [vmem:[%s662_s2] ss:$0 sm:$0xff]  ;;  %v168_v17 = vld [vmem:[%s665_s5 + $0x8] sm:$0xff]  ;;  %v170_v20 = vld [vmem:[%s665_s5 + $0x18] sm:$0xff]  ;;  %vm366_vm3 = vcmask 64512  }
  0x15   :  { %v167_v16 = vld [vmem:[%s665_s5] sm:$0xff]  ;;  %v442_v21 = vpack.c.bf16 %v170_v20, %v169_v19  ;;  %v282_v43 = vld [vmem:[%s669_s9 + $0x8] sm:$0xff]  ;;  %v283_v45 = vld [vmem:[%s669_s9 + $0x10] sm:$0xff] }
  0x16   :  { %437 = vmatpush3.bf16.msra.mxu0 %v436_v4  ;;  %v439_v18 = vpack.c.bf16 %v168_v17, %v167_v16  ;;  %v385_v26 = vld [vmem:[%s663_s3] ss:$0 sm:$0xff]  ;;  %v284_v46 = vld [vmem:[%s669_s9 + $0x18] sm:$0xff] }
  0x17   :  { %444 = vmatprep.subr.bf16.mxu0 %v510_v0  ;;  %v386_v28 = vld [vmem:[%s664_s4] ss:$0 sm:$0xff]  ;;  %v448_v47 = vpack.c.bf16 %v284_v46, %v283_v45 }
  0x18   :  { %440 = vmatpush3.bf16.msra.mxu1 %v439_v18  ;;  %v387_v32 = vld [vmem:[%s666_s6] ss:$0 sm:$0xff] }
  0x19   :  { %411 = vmatmul.mubr.msk.f32.vlgmr.msra.gmra.mrb[0].mxu0 %vm61_vm1, %v51_v5  ;;  %441 = vmatprep.subr.bf16.mxu1 %v510_v0  ;;  %v281_v42 = vld [vmem:[%s669_s9] sm:$0xff] }
  0x1a   :  { %432 = vmatprep.mubr.msk.f32.mxu0 %vm511_vm0, %v512_v1  ;;  %v445_v44 = vpack.c.bf16 %v282_v43, %v281_v42  ;;  %v389_v52 = vld [vmem:[%s667_s7] ss:$0 sm:$0xff]  ;;  %s374_s7 = sshll.u32 %s513_s15, 4  ;;  %s375_s7 = int_to_ptr.vmem [resolvable:$true] %s374_s7 }
  0x1b   :  { %v390_v54 = vld [vmem:[%s668_s8] ss:$0 sm:$0xff]  ;;  %s483_s8 = scalar_lea.vmem %s375_s7, 128  ;;  %p488_p9 = scmp.lt.s32.totalorder %s375_s7, %s375_s7 }
  0x1c   :  { %443 = vmatpush3.bf16.msra.mxu1 %v442_v21  ;;  %446 = vmatpush3.bf16.msra.mxu0 %v445_v44  ;;  %v391_v58 = vld [vmem:[%s670_s10] ss:$0 sm:$0xff]  ;;  %p484_p8 = scmp.ne.s32.totalorder %s375_s7, %s483_s8  ;;  %p489_p10 = scmp.lt.s32.totalorder %s483_s8, %s483_s8 }
  0x1d   :  { %447 = vmatprep.subr.bf16.mxu0 %v510_v0 }
  0x1e   :  { %p490_p11 = por %p489_p10, %p488_p9 }
  0x20   :  { %449 = vmatpush3.bf16.msra.mxu0 %v448_v47  ;;  %p491_p12 = pnand %p490_p11, %p484_p8 }
  0xec   :  { %v131_v7 = vpop.f32.mrb[0].mxu0 }
  0xed   :  { %v132_v8 = vadd.f32 %v383_v6, %v131_v7  ;;  %v412_v9 = vpop.f32.mrb[1].mxu0 }
  0xef   :  { %v138_v10 = vsel %vm137_vm2, %v132_v8, 0.0 }
  0xf0   :  { %139 = vadd.xlane.f32.xlu0 %v138_v10 }
 0x17d   :  { %v140_v11 = vpop.xlane.xlu0 %139 }
 0x17e   :  { %v142_v12 = vmul.f32 0.03125, %v140_v11 }
 0x180   :  { %v143_v13 = vsub.f32 %v132_v8, %v142_v12 }
 0x182   :  { %v144_v14 = vmul.f32 %v143_v13, %v143_v13 }
 0x184   :  { %v145_v15 = vsel %vm137_vm2, %v144_v14, 0.0 }
 0x185   :  { %146 = vadd.xlane.f32.xlu0 %v145_v15 }
 0x212   :  { %v147_v22 = vpop.xlane.xlu0 %146 }
 0x213   :  { %v148_v23 = vmul.f32 0.03125, %v147_v22 }
 0x215   :  { %v149_v24 = vadd.f32 1e-05, %v148_v23 }
 0x217   :  { %455 = vrsqrt.f32 %v149_v24 }
 0x221   :  { %v456_v25 = vpop.eup %455 }
 0x222   :  { %v151_v27 = vmul.f32 %v456_v25, %v143_v13 }
 0x224   :  { %v158_v29 = vmul.f32 %v385_v26, %v151_v27 }
 0x226   :  { %v165_v30 = vadd.f32 %v386_v28, %v158_v29 }
 0x228   :  { %v166_v31 = vmax.f32 %v165_v30, 0.0 }
 0x22a   :  { %422 = vmatmul.mubr.msk.f32.vlgmr.msra.gmra.mrb[0].mxu1 %vm137_vm2, %v166_v31 }
 0x2fd   :  { %v247_v33 = vpop.f32.mrb[0].mxu1 }
 0x2fe   :  { %v248_v34 = vadd.f32 %v387_v32, %v247_v33  ;;  %v423_v35 = vpop.f32.mrb[1].mxu1 }
 0x300   :  { %v253_v36 = vsel %vm137_vm2, %v248_v34, 0.0 }
 0x301   :  { %254 = vadd.xlane.f32.xlu1 %v253_v36 }
 0x38e   :  { %v255_v37 = vpop.xlane.xlu1 %254 }
 0x38f   :  { %v256_v38 = vmul.f32 0.03125, %v255_v37 }
 0x391   :  { %v257_v39 = vsub.f32 %v248_v34, %v256_v38 }
 0x393   :  { %v258_v40 = vmul.f32 %v257_v39, %v257_v39 }
 0x395   :  { %v259_v41 = vsel %vm137_vm2, %v258_v40, 0.0 }
 0x396   :  { %260 = vadd.xlane.f32.xlu1 %v259_v41 }
 0x423   :  { %v261_v48 = vpop.xlane.xlu1 %260 }
 0x424   :  { %v262_v49 = vmul.f32 0.03125, %v261_v48 }
 0x426   :  { %v263_v50 = vadd.f32 1e-05, %v262_v49 }
 0x428   :  { %457 = vrsqrt.f32 %v263_v50 }
 0x432   :  { %v458_v51 = vpop.eup %457 }
 0x433   :  { %v265_v53 = vmul.f32 %v458_v51, %v257_v39 }
 0x435   :  { %v272_v55 = vmul.f32 %v389_v52, %v265_v53 }
 0x437   :  { %v279_v56 = vadd.f32 %v390_v54, %v272_v55 }
 0x439   :  { %v280_v57 = vmax.f32 %v279_v56, 0.0 }
 0x43b   :  { %433 = vmatmul.mubr.msk.f32.vlgmr.msra.gmra.mrb[2].mxu0 %vm137_vm2, %v280_v57 }
 0x50e   :  { %v361_v59 = vpop.f32.mrb[2].mxu0 }
 0x50f   :  { %v362_v60 = vadd.f32 %v391_v58, %v361_v59  ;;  %v434_v61 = vpop.f32.mrb[3].mxu0 }
 0x511   :  { %459 = vtanh.f32 %v362_v60 }
 0x51b   :  { %v460_v62 = vpop.eup %459 }
 0x51c   :  { %367 = vst.msk [vmem:[#allocation5] sm:$0xff] %vm366_vm3, %v460_v62 }
 0x51d   :  { %494 = shalt.err (!%p491_p12)
}
 0x51e   :  { %s495_s10 = scalar_lea.hbm %s671_s11, 128 }
 0x51f   :  { %p496_p13 = scmp.ne.s32.totalorder %s671_s11, %s495_s10  ;;  %p499_p0 = scmp.lt.u32.totalorder %s495_s10, %s671_s11 }
 0x521   :  { %p501_p1 = pnand %p499_p0, %p496_p13 }
 0x523   :  { %504 = shalt.err (!%p501_p1)
}
 0x524   :  { %377 = dma.vmem_to_hbm [thread:$0]  %s375_s7, 128, %s671_s11, [#allocation4]  }
 0x525   :  { %507 = dma.done.wait [#allocation4], 128  }
 0x526   :  { %508 = vsyncadd [#allocation4], 4294967168 }
 0x527   :  { %381 = vsyncpa [#allocation3], 1 }
 0x528   :  { %382 = vsyncpa [#allocation4], 1 }

</bundles_post_ra>
